<compile_context>
chip_gen: v5e
topology: v5e:2x2
jax: 0.10.0
libtpu: 0.0.40
codegen_flags: <defaults>
</compile_context>

<pallas_src>
import functools

import jax
import jax.numpy as jnp
from jax.experimental import pallas as pl
from jax.experimental.pallas import tpu as pltpu

LANES = 128
SUBLANES = 8


def _round_up(a, b):
    return pl.cdiv(a, b) * b


def _focal_loss_kernel(x_ref, t_ref, acc_ref, *, alpha, gamma, pos_weight,
                       n_valid, tile_rows, n_inner, n_blocks, has_pad):
    o = pl.program_id(0)
    i = pl.program_id(1)

    @pl.when(i == 0)
    def _():
        acc_ref[...] = jnp.zeros_like(acc_ref)

    x = x_ref[...].astype(jnp.float32)
    t = t_ref[...].astype(jnp.float32)

    # Numerically-stable BCE-with-logits with pos_weight (matches PyTorch):
    #   bce = (1 - t) * x + (1 + (pos_weight - 1) * t) * softplus(-x)
    #   softplus(-x) = max(-x, 0) + log1p(exp(-|x|))
    sp_neg = jnp.maximum(-x, 0.0) + jnp.log1p(jnp.exp(-jnp.abs(x)))
    bce = (1.0 - t) * x + (1.0 + (pos_weight - 1.0) * t) * sp_neg

    pt = jnp.exp(-bce)
    u = jnp.maximum(1.0 - pt, 0.0)  # clamp: pt can exceed 1.0 by a few ULPs

    # (1 - pt) ** gamma: integer gamma -> repeated multiplies (avoids pow -> exp(log)
    # which would add 2 EUP transcendentals per element on the single EUP slot).
    if float(gamma) == int(gamma) and int(gamma) >= 0:
        mod = None
        for _ in range(int(gamma)):
            mod = u if mod is None else mod * u
    else:
        mod = u ** jnp.float32(gamma)

    f_loss = bce if mod is None else mod * bce
    if alpha != 1.0:
        f_loss = alpha * f_loss

    def _accum(vals):
        # Per-vreg partial sums: pure VPU adds into the resident (8,128) output block.
        acc_ref[...] += vals.reshape(-1, SUBLANES, LANES).sum(axis=0)

    if has_pad:
        blk = o * n_inner + i  # global block index
        is_last = blk == (n_blocks - 1)

        @pl.when(blk != (n_blocks - 1))
        def _():
            _accum(f_loss)

        @pl.when(is_last)
        def _():
            row = (jax.lax.broadcasted_iota(jnp.int32, f_loss.shape, 0)
                   + blk * tile_rows)
            col = jax.lax.broadcasted_iota(jnp.int32, f_loss.shape, 1)
            flat_idx = row * LANES + col
            _accum(jnp.where(flat_idx < n_valid, f_loss, 0.0))
    else:
        _accum(f_loss)


def focal_loss(inputs, targets, *, alpha=1.0, gamma=2.0, weight=20.0,
               tile_rows=1024):
    """Focal loss with logits + pos_weight BCE, mean-reduced (reduce=True)."""
    assert inputs.shape == targets.shape
    n_valid = int(inputs.size)

    x = inputs.reshape(-1)
    t = targets.reshape(-1)

    rows_needed = pl.cdiv(n_valid, LANES)
    tr = min(_round_up(int(tile_rows), SUBLANES),
             _round_up(rows_needed, SUBLANES))
    padded_rows = _round_up(rows_needed, tr)
    pad = padded_rows * LANES - n_valid
    has_pad = pad > 0
    if has_pad:  # only pad when the flat size is not already tile-aligned
        x = jnp.pad(x, (0, pad))
        t = jnp.pad(t, (0, pad))
    x2 = x.reshape(padded_rows, LANES)
    t2 = t.reshape(padded_rows, LANES)

    n_blocks = padded_rows // tr
    # Leading "parallel" axis: lets v7x spread blocks across both TensorCores.
    n_outer = 2 if (n_blocks % 2 == 0 and n_blocks >= 2) else 1
    n_inner = n_blocks // n_outer

    kernel = functools.partial(
        _focal_loss_kernel,
        alpha=float(alpha), gamma=float(gamma), pos_weight=float(weight),
        n_valid=n_valid, tile_rows=tr, n_inner=n_inner, n_blocks=n_blocks,
        has_pad=has_pad)

    partial_sums = pl.pallas_call(
        kernel,
        out_shape=jax.ShapeDtypeStruct((n_outer * SUBLANES, LANES), jnp.float32),
        grid=(n_outer, n_inner),
        in_specs=[
            pl.BlockSpec((tr, LANES), lambda o, i: (o * n_inner + i, 0)),
            pl.BlockSpec((tr, LANES), lambda o, i: (o * n_inner + i, 0)),
        ],
        out_specs=pl.BlockSpec((SUBLANES, LANES), lambda o, i: (o, 0)),
        compiler_params=pltpu.CompilerParams(
            dimension_semantics=("parallel", "arbitrary")),
    )(x2, t2)

    # Tiny final cross-lane reduction + mean, done once in XLA.
    return jnp.sum(partial_sums) / jnp.float32(n_valid)


def _focal_loss_ref(inputs, targets, *, alpha=1.0, gamma=2.0, weight=20.0):
    x = inputs.astype(jnp.float32)
    t = targets.astype(jnp.float32)
    sp = jnp.maximum(-x, 0.0) + jnp.log1p(jnp.exp(-jnp.abs(x)))
    bce = (1.0 - t) * x + (1.0 + (weight - 1.0) * t) * sp
    pt = jnp.exp(-bce)
    return jnp.mean(alpha * (1.0 - pt) ** gamma * bce)


if __name__ == "__main__":
    key = jax.random.PRNGKey(0)
    k1, k2, k3, k4 = jax.random.split(key, 4)

    # NCHW input logits and binary targets, as the UNet loss would see them.
    x = jax.random.normal(k1, (2, 4, 16, 16), dtype=jnp.float32)
    t = jax.random.bernoulli(k2, 0.3, (2, 4, 16, 16)).astype(jnp.float32)
    loss = jax.block_until_ready(focal_loss(x, t))
    ref = jax.block_until_ready(_focal_loss_ref(x, t))
    assert jnp.allclose(loss, ref, rtol=1e-5, atol=1e-6), (loss, ref)

    # Ragged shape that exercises the padded / masked final tile.
    x2 = jax.random.normal(k3, (1, 3, 7, 9), dtype=jnp.float32)
    t2 = jax.random.bernoulli(k4, 0.5, (1, 3, 7, 9)).astype(jnp.float32)
    loss2 = jax.block_until_ready(focal_loss(x2, t2))
    ref2 = jax.block_until_ready(_focal_loss_ref(x2, t2))
    assert jnp.allclose(loss2, ref2, rtol=1e-5, atol=1e-6), (loss2, ref2)

    print("KERNEL_OK")
</pallas_src>

<mosaic_0001>
module attributes {stable_mosaic.version = 11 : i64} {
  func.func @_focal_loss_kernel(%arg0: i32, %arg1: i32, %arg2: memref<16x128xf32, #tpu.memory_space<vmem>>, %arg3: memref<16x128xf32, #tpu.memory_space<vmem>>, %arg4: memref<8x128xf32, #tpu.memory_space<vmem>>) attributes {dimension_semantics = [#tpu.dimension_semantics<parallel>, #tpu.dimension_semantics<arbitrary>], iteration_bounds = array<i64: 1, 1>, scalar_prefetch = 0 : i64, scratch_operands = 0 : i64, tpu.core_type = #tpu.core_type<tc>, window_params = [{transform_indices = @transform_0, window_bounds = array<i64: 16, 128>}, {transform_indices = @transform_1, window_bounds = array<i64: 16, 128>}, {transform_indices = @transform_2, window_bounds = array<i64: 8, 128>}]} {
    %c0_i32 = arith.constant 0 : i32
    %0 = arith.cmpi eq, %arg1, %c0_i32 : i32
    %1 = arith.extui %0 : i1 to i32
    %c0_i32_0 = arith.constant 0 : i32
    %2 = arith.cmpi ne, %1, %c0_i32_0 : i32
    scf.if %2 {
      %cst_17 = arith.constant 0.000000e+00 : f32
      %38 = vector.broadcast %cst_17 : f32 to vector<8x128xf32>
      %c0_18 = arith.constant 0 : index
      %c0_19 = arith.constant 0 : index
      %39 = vector.load %arg4[%c0_18, %c0_19] : memref<8x128xf32, #tpu.memory_space<vmem>>, vector<8x128xf32>
      tpu.vector_store %arg4[%c0_18, %c0_19], %38 {strides = array<i32>} : memref<8x128xf32, #tpu.memory_space<vmem>>, vector<8x128xf32>,
    } else {
    }
    %c0 = arith.constant 0 : index
    %c0_1 = arith.constant 0 : index
    %3 = vector.load %arg2[%c0, %c0_1] : memref<16x128xf32, #tpu.memory_space<vmem>>, vector<16x128xf32>
    %c0_2 = arith.constant 0 : index
    %c0_3 = arith.constant 0 : index
    %4 = vector.load %arg3[%c0_2, %c0_3] : memref<16x128xf32, #tpu.memory_space<vmem>>, vector<16x128xf32>
    %cst = arith.constant 0.000000e+00 : f32
    %5 = vector.broadcast %cst : f32 to vector<16x128xf32>
    %6 = arith.subf %5, %3 : vector<16x128xf32>
    %cst_4 = arith.constant 0.000000e+00 : f32
    %7 = vector.broadcast %cst_4 : f32 to vector<16x128xf32>
    %8 = arith.maximumf %6, %7 : vector<16x128xf32>
    %9 = math.absf %3 : vector<16x128xf32>
    %cst_5 = arith.constant 0.000000e+00 : f32
    %10 = vector.broadcast %cst_5 : f32 to vector<16x128xf32>
    %11 = arith.subf %10, %9 : vector<16x128xf32>
    %12 = math.exp %11 : vector<16x128xf32>
    %13 = math.log1p %12 : vector<16x128xf32>
    %14 = arith.addf %8, %13 : vector<16x128xf32>
    %cst_6 = arith.constant 1.000000e+00 : f32
    %15 = vector.broadcast %cst_6 : f32 to vector<16x128xf32>
    %16 = arith.subf %15, %4 : vector<16x128xf32>
    %17 = arith.mulf %16, %3 : vector<16x128xf32>
    %cst_7 = arith.constant 1.900000e+01 : f32
    %18 = vector.broadcast %cst_7 : f32 to vector<16x128xf32>
    %19 = arith.mulf %18, %4 : vector<16x128xf32>
    %cst_8 = arith.constant 1.000000e+00 : f32
    %20 = vector.broadcast %cst_8 : f32 to vector<16x128xf32>
    %21 = arith.addf %20, %19 : vector<16x128xf32>
    %22 = arith.mulf %21, %14 : vector<16x128xf32>
    %23 = arith.addf %17, %22 : vector<16x128xf32>
    %cst_9 = arith.constant 0.000000e+00 : f32
    %24 = vector.broadcast %cst_9 : f32 to vector<16x128xf32>
    %25 = arith.subf %24, %23 : vector<16x128xf32>
    %26 = math.exp %25 : vector<16x128xf32>
    %cst_10 = arith.constant 1.000000e+00 : f32
    %27 = vector.broadcast %cst_10 : f32 to vector<16x128xf32>
    %28 = arith.subf %27, %26 : vector<16x128xf32>
    %cst_11 = arith.constant 0.000000e+00 : f32
    %29 = vector.broadcast %cst_11 : f32 to vector<16x128xf32>
    %30 = arith.maximumf %28, %29 : vector<16x128xf32>
    %31 = arith.mulf %30, %30 : vector<16x128xf32>
    %32 = arith.mulf %31, %23 : vector<16x128xf32>
    %c0_12 = arith.constant 0 : index
    %c0_13 = arith.constant 0 : index
    %33 = vector.load %arg4[%c0_12, %c0_13] : memref<8x128xf32, #tpu.memory_space<vmem>>, vector<8x128xf32>
    %34 = vector.shape_cast %32 : vector<16x128xf32> to vector<2x8x128xf32>
    %cst_14 = arith.constant dense<0.000000e+00> : vector<8x128xf32>
    %35 = vector.multi_reduction <add>, %34, %cst_14 [0] : vector<2x8x128xf32> to vector<8x128xf32>
    %36 = arith.addf %33, %35 : vector<8x128xf32>
    %c0_15 = arith.constant 0 : index
    %c0_16 = arith.constant 0 : index
    %37 = vector.load %arg4[%c0_15, %c0_16] : memref<8x128xf32, #tpu.memory_space<vmem>>, vector<8x128xf32>
    tpu.vector_store %arg4[%c0_15, %c0_16], %36 {strides = array<i32>} : memref<8x128xf32, #tpu.memory_space<vmem>>, vector<8x128xf32>,
    return
  }
  func.func @transform_0(%arg0: i32, %arg1: i32) -> (i32, i32) {
    %c1_i32 = arith.constant 1 : i32
    %0 = arith.muli %arg0, %c1_i32 : i32
    %1 = arith.addi %0, %arg1 : i32
    %c0_i32 = arith.constant 0 : i32
    %c0_i32_0 = arith.constant 0 : i32
    return %1, %c0_i32 : i32, i32
  }
  func.func @transform_1(%arg0: i32, %arg1: i32) -> (i32, i32) {
    %c1_i32 = arith.constant 1 : i32
    %0 = arith.muli %arg0, %c1_i32 : i32
    %1 = arith.addi %0, %arg1 : i32
    %c0_i32 = arith.constant 0 : i32
    %c0_i32_0 = arith.constant 0 : i32
    return %1, %c0_i32 : i32, i32
  }
  func.func @transform_2(%arg0: i32, %arg1: i32) -> (i32, i32) {
    %c0_i32 = arith.constant 0 : i32
    %c0_i32_0 = arith.constant 0 : i32
    return %arg0, %c0_i32 : i32, i32
  }
}

</mosaic_0001>

<bundles_post_ra>
// kernel: tpu_custom_call.1
= control target key start
LH: loop header
LB: loop body
LE: loop exit
PB: predicated region body
PF: predicated region fallthrough
CT: control target
= control target key end

     0   :  { %7 = vsyncpa [#allocation3], 0  ;;  %s270_s0 = inlined_call_operand.hbm [shape: f32[16,128], index: 0, kind: input, shape index: {}]   ;;  %s271_s1 = inlined_call_operand.hbm [shape: f32[16,128], index: 1, kind: input, shape index: {}]   ;;  %s272_s2 = inlined_call_operand.hbm [shape: f32[8,128], index: 2, kind: output, shape index: {}]  }
   0x1   :  { %8 = vsyncpa [#allocation6], 0 }
   0x2   :  { %9 = vsyncpa [#allocation4], 0  ;;  %s18_s11 = sshll.u32 %s270_s0, 4  ;;  %s241_s12 = smov [#allocation2]   ;;  %s19_s11 = int_to_ptr.hbm [resolvable:$true] %s18_s11 }
   0x3   :  { %s20_s13 = sshll.u32 %s241_s12, 4  ;;  %s35_s16 = sshll.u32 %s271_s1, 4  ;;  %s21_s13 = int_to_ptr.vmem [resolvable:$true] %s20_s13  ;;  %s36_s16 = int_to_ptr.hbm [resolvable:$true] %s35_s16 }
   0x4   :  { %s242_s17 = smov 128   ;;  %s243_s18 = smov 8  }
   0x5   :  { %26 = dma.hbm_to_vmem [thread:$0]  %s19_s11, 256, %s21_s13, [#allocation3], %s242_s17, %s242_s17, %s243_s18  }
   0x6   :  { %s244_s19 = smov [#allocation5]  }
   0x7   :  { %s37_s20 = sshll.u32 %s244_s19, 4  ;;  %s38_s20 = int_to_ptr.vmem [resolvable:$true] %s37_s20 }
   0x8   :  { %43 = dma.hbm_to_vmem [thread:$0]  %s36_s16, 256, %s38_s20, [#allocation6], %s242_s17, %s242_s17, %s243_s18  }
   0x9   :  { %235 = dma.done.wait [#allocation3], 256  }
   0xa   :  { %236 = vsyncadd [#allocation3], 4294967040 }
   0xb   :  { %237 = dma.done.wait [#allocation6], 256  }
   0xc   :  { %238 = vsyncadd [#allocation6], 4294967040  ;;  %v61_v0 = vld [vmem:[#allocation2] sm:$0xff]  ;;  %v62_v1 = vld [vmem:[#allocation2 + $0x8] sm:$0xff]  ;;  %s245_s0 = smov [#allocation7]   ;;  %s134_s23 = sshll.u32 %s272_s2, 4  ;;  %s135_s23 = int_to_ptr.hbm [resolvable:$true] %s134_s23 }
   0xd   :  { %v69_v2 = vand.u32 2147483647, %v61_v0  ;;  %v70_v3 = vand.u32 2147483647, %v62_v1  ;;  %v63_v14 = vld [vmem:[#allocation5] sm:$0xff]  ;;  %v64_v16 = vld [vmem:[#allocation5 + $0x8] sm:$0xff] }
   0xe   :  { %v65_v17 = vsub.f32 0.0, %v61_v0  ;;  %v66_v20 = vsub.f32 0.0, %v62_v1  ;;  %v101_v22 = vmul.f32 19.0, %v63_v14  ;;  %v102_v24 = vmul.f32 19.0, %v64_v16  ;;  %s132_s1 = sshll.u32 %s245_s0, 4  ;;  %s133_s1 = int_to_ptr.vmem [resolvable:$true] %s132_s1 }
   0xf   :  { %v71_v4 = vsub.f32 0.0, %v69_v2  ;;  %v72_v5 = vsub.f32 0.0, %v70_v3  ;;  %v97_v28 = vsub.f32 1.0, %v63_v14  ;;  %v98_v32 = vsub.f32 1.0, %v64_v16 }
  0x10   :  { %v67_v26 = vmax.f32 %v65_v17, 0.0  ;;  %v68_v30 = vmax.f32 %v66_v20, 0.0  ;;  %v103_v34 = vadd.f32 1.0, %v101_v22  ;;  %v104_v36 = vadd.f32 1.0, %v102_v24 }
  0x11   :  { %v73_v6 = vmul.f32 1.442695, %v71_v4  ;;  %v75_v7 = vmul.f32 1.442695, %v72_v5  ;;  %v99_v39 = vmul.f32 %v97_v28, %v61_v0  ;;  %v100_v41 = vmul.f32 %v98_v32, %v62_v1 }
  0x13   :  { %151 = vpow2.f32 %v73_v6 }
  0x14   :  { %153 = vpow2.f32 %v75_v7 }
  0x19   :  { %v152_v8 = vpop.eup %151 }
  0x1a   :  { %v154_v9 = vpop.eup %153  ;;  %v77_v10 = vadd.f32 1.0, %v152_v8  ;;  %v80_v11 = vmul.f32 -0.5, %v152_v8  ;;  %v83_v18 = vand.u32 2147483647, %v152_v8 }
  0x1b   :  { %v86_v12 = vadd.f32 1.0, %v154_v9  ;;  %v89_v13 = vmul.f32 -0.5, %v154_v9  ;;  %v92_v21 = vand.u32 2147483647, %v154_v9 }
  0x1c   :  { %155 = vlog2.f32 %v77_v10  ;;  %v81_v15 = vadd.f32 1.0, %v80_v11  ;;  %vm84_vm0 = vcmp.lt.f32.partialorder %v83_v18, 0.0004427343 }
  0x1d   :  { %157 = vlog2.f32 %v86_v12  ;;  %v90_v19 = vadd.f32 1.0, %v89_v13  ;;  %vm93_vm1 = vcmp.lt.f32.partialorder %v92_v21, 0.0004427343 }
  0x1e   :  { %v82_v23 = vmul.f32 %v152_v8, %v81_v15 }
  0x1f   :  { %v91_v27 = vmul.f32 %v154_v9, %v90_v19 }
  0x22   :  { %v156_v25 = vpop.eup %155 }
  0x23   :  { %v158_v29 = vpop.eup %157  ;;  %v79_v31 = vmul.f32 0.6931472, %v156_v25 }
  0x24   :  { %v88_v33 = vmul.f32 0.6931472, %v158_v29 }
  0x25   :  { %v85_v35 = vsel %vm84_vm0, %v82_v23, %v79_v31 }
  0x26   :  { %v94_v37 = vsel %vm93_vm1, %v91_v27, %v88_v33  ;;  %v95_v38 = vadd.f32 %v85_v35, %v67_v26 }
  0x27   :  { %v96_v40 = vadd.f32 %v94_v37, %v68_v30 }
  0x28   :  { %v105_v42 = vmul.f32 %v103_v34, %v95_v38 }
  0x29   :  { %v106_v43 = vmul.f32 %v104_v36, %v96_v40 }
  0x2a   :  { %v107_v44 = vadd.f32 %v105_v42, %v99_v39 }
  0x2b   :  { %v108_v45 = vadd.f32 %v106_v43, %v100_v41 }
  0x2c   :  { %v109_v46 = vsub.f32 0.0, %v107_v44 }
  0x2d   :  { %v110_v47 = vsub.f32 0.0, %v108_v45 }
  0x2e   :  { %v111_v48 = vmul.f32 1.442695, %v109_v46 }
  0x2f   :  { %v113_v49 = vmul.f32 1.442695, %v110_v47 }
  0x30   :  { %159 = vpow2.f32 %v111_v48 }
  0x31   :  { %161 = vpow2.f32 %v113_v49 }
  0x36   :  { %v160_v50 = vpop.eup %159 }
  0x37   :  { %v162_v51 = vpop.eup %161  ;;  %v115_v52 = vsub.f32 1.0, %v160_v50 }
  0x38   :  { %v116_v53 = vsub.f32 1.0, %v162_v51 }
  0x39   :  { %v117_v54 = vmax.f32 %v115_v52, 0.0 }
  0x3a   :  { %v118_v55 = vmax.f32 %v116_v53, 0.0 }
  0x3b   :  { %v119_v56 = vmul.f32 %v117_v54, %v117_v54 }
  0x3c   :  { %v120_v57 = vmul.f32 %v118_v55, %v118_v55 }
  0x3d   :  { %v121_v58 = vmul.f32 %v119_v56, %v107_v44 }
  0x3e   :  { %v122_v59 = vmul.f32 %v120_v57, %v108_v45 }
  0x40   :  { %v124_v60 = vadd.f32 %v122_v59, %v121_v58 }
  0x42   :  { %126 = vst [vmem:[#allocation7] sm:$0xff] %v124_v60 }
  0x43   :  { %137 = dma.vmem_to_hbm [thread:$0]  %s133_s1, 128, %s135_s23, [#allocation4]  }
  0x44   :  { %239 = dma.done.wait [#allocation4], 128  }
  0x45   :  { %240 = vsyncadd [#allocation4], 4294967168 }
  0x46   :  { %142 = vsyncpa [#allocation3], 1 }
  0x47   :  { %143 = vsyncpa [#allocation6], 1 }
  0x48   :  { %144 = vsyncpa [#allocation4], 1 }

</bundles_post_ra>
